<compile_context>
chip_gen: v7x
topology: tpu7x:2x2x1
jax: 0.10.0
libtpu: 0.0.40
codegen_flags: <defaults>
</compile_context>

<pallas_src>
import functools

import jax
import jax.numpy as jnp
from jax.experimental import pallas as pl
from jax.experimental.pallas import tpu as pltpu

# ---------------------------------------------------------------------------
# ConvBlock hyper-parameters (the **kwargs of nn.Conv2d in the reference code)
# ---------------------------------------------------------------------------
IN_CHANNELS = 4
OUT_CHANNELS = 8
KERNEL_SIZE = 3
STRIDE = 1
PADDING = 1
BN_EPS = 1e-5

_LANE = 128
_SUBLANE = 8


def _round_up(x, m):
    return ((x + m - 1) // m) * m


# ---------------------------------------------------------------------------
# Pallas kernel: conv as rolled matmuls + fused training-mode BatchNorm
# ---------------------------------------------------------------------------
def _conv_bn_kernel(x_ref, w_ref, gb_ref, mask_ref, o_ref, *,
                    num_samples, rolls, eps, count):
    """x_ref:    [N, Cin_p, L]    flattened zero-padded input (L % 128 == 0)
       w_ref:    [T, Cout, Cin_p] one [Cout, Cin_p] tap matrix per kernel pos
       gb_ref:   [Cout, 2]        col 0 = gamma, col 1 = beta
       mask_ref: [1, L]           1.0 at columns holding valid output pixels
       o_ref:    [N, Cout, L]     lane-dense output (valid pixels at masked cols)
    """
    cout = o_ref.shape[1]
    maskf = mask_ref[...]                                   # [1, L]

    s1 = jnp.zeros((cout, 1), jnp.float32)                  # sum(y)   per channel
    s2 = jnp.zeros((cout, 1), jnp.float32)                  # sum(y*y) per channel

    for smp in range(num_samples):                          # static, N is tiny
        xs = x_ref[smp]                                     # [Cin_p, L]
        acc = jnp.zeros((cout, xs.shape[-1]), jnp.float32)
        for t, r in enumerate(rolls):                       # 9 static taps
            xr = pltpu.roll(xs, r, axis=1) if r else xs     # XLU lane rotate
            acc = acc + jnp.dot(w_ref[t], xr,               # MXU, f32 accumulate
                                preferred_element_type=jnp.float32)
        ym = acc * maskf                                    # zero don't-care cols
        s1 = s1 + jnp.sum(ym, axis=1, keepdims=True)
        s2 = s2 + jnp.sum(ym * acc, axis=1, keepdims=True)  # mask * y^2
        o_ref[smp] = acc                                    # stash raw conv result

    inv_count = 1.0 / count
    mean = s1 * inv_count
    var = s2 * inv_count - mean * mean                      # biased batch variance
    inv_std = jax.lax.rsqrt(var + eps)                      # EUP
    scale = gb_ref[:, 0:1] * inv_std                        # gamma / sqrt(var+eps)
    shift = gb_ref[:, 1:2] - mean * scale                   # beta - mean*scale

    for smp in range(num_samples):                          # single FMA pass
        o_ref[smp] = (o_ref[smp] * scale + shift).astype(o_ref.dtype)


# ---------------------------------------------------------------------------
# Wrapper: cheap layout prep (pad + reshape only), pallas_call, slice to NCHW
# ---------------------------------------------------------------------------
def conv_block_forward(x, conv_w, conv_b, bn_gamma, bn_beta, *,
                       stride=STRIDE, padding=PADDING, eps=BN_EPS):
    """Forward of ConvBlock. x: [N, Cin, H, W] (NCHW). Returns [N, Cout, Hout, Wout]."""
    del conv_b  # cancelled exactly by BatchNorm mean subtraction (see header)
    if stride != 1:
        raise NotImplementedError("this fused kernel assumes stride == 1")

    n, cin, h, w = x.shape
    cout, _, kh, kw = conv_w.shape
    hp, wp = h + 2 * padding, w + 2 * padding
    hout, wout = hp - kh + 1, wp - kw + 1
    smax = (kh - 1) * wp + (kw - 1)               # largest flat tap offset
    lreal = hp * wp
    l = _round_up(smax + lreal, _LANE)            # lane-dense working width
    cin_p = _round_up(cin, _SUBLANE)

    # --- host prep: pad + reshape only (no im2col blow-up, no transposes of x)
    xp = jnp.pad(x, ((0, 0), (0, cin_p - cin),
                     (padding, padding), (padding, padding)))
    xf = xp.reshape(n, cin_p, lreal)
    xf = jnp.pad(xf, ((0, 0), (0, 0), (0, l - lreal)))           # [N, Cin_p, L]

    w9 = jnp.transpose(conv_w, (2, 3, 0, 1)).reshape(kh * kw, cout, cin)
    w9 = jnp.pad(w9, ((0, 0), (0, 0), (0, cin_p - cin)))         # [T, Cout, Cin_p]

    gb = jnp.stack([bn_gamma, bn_beta], axis=1)                  # [Cout, 2]

    # Output pixel (oh, ow) lives at flat column smax + oh*wp + ow.
    col = jnp.arange(l)
    u = col - smax
    valid = (u >= 0) & ((u // wp) < hout) & ((u % wp) < wout)
    maskf = valid.astype(jnp.float32).reshape(1, l)

    # Right-rotate amount per tap: column j reads input flat index j - smax + s.
    rolls = tuple(smax - (ky * wp + kx) for ky in range(kh) for kx in range(kw))
    count = float(n * hout * wout)

    kernel = functools.partial(_conv_bn_kernel, num_samples=n, rolls=rolls,
                               eps=eps, count=count)

    out_wide = pl.pallas_call(
        kernel,
        out_shape=jax.ShapeDtypeStruct((n, cout, l), jnp.float32),
        grid=(1,),
        in_specs=[
            pl.BlockSpec((n, cin_p, l), lambda i: (0, 0, 0)),
            pl.BlockSpec((kh * kw, cout, cin_p), lambda i: (0, 0, 0)),
            pl.BlockSpec((cout, 2), lambda i: (0, 0)),
            pl.BlockSpec((1, l), lambda i: (0, 0)),
        ],
        out_specs=pl.BlockSpec((n, cout, l), lambda i: (0, 0, 0)),
        compiler_params=pltpu.CompilerParams(
            dimension_semantics=("arbitrary",)),
    )(xf, w9, gb, maskf)

    # --- host post: slice + reshape straight to NCHW (no transpose, no re-pack)
    out = out_wide[:, :, smax:smax + lreal].reshape(n, cout, hp, wp)
    return out[:, :, :hout, :wout]


# ---------------------------------------------------------------------------
# Pure-JAX reference (silent correctness check; includes the conv bias)
# ---------------------------------------------------------------------------
def _reference(x, conv_w, conv_b, bn_gamma, bn_beta,
               *, stride=STRIDE, padding=PADDING, eps=BN_EPS):
    y = jax.lax.conv_general_dilated(
        x, conv_w, window_strides=(stride, stride),
        padding=((padding, padding), (padding, padding)),
        dimension_numbers=("NCHW", "OIHW", "NCHW"),
    ) + conv_b.reshape(1, -1, 1, 1)
    mean = jnp.mean(y, axis=(0, 2, 3), keepdims=True)
    var = jnp.mean((y - mean) ** 2, axis=(0, 2, 3), keepdims=True)
    yhat = (y - mean) * jax.lax.rsqrt(var + eps)
    return yhat * bn_gamma.reshape(1, -1, 1, 1) + bn_beta.reshape(1, -1, 1, 1)


# ---------------------------------------------------------------------------
# Deterministic parameter init (mimics PyTorch defaults in spirit)
# ---------------------------------------------------------------------------
def init_params(key):
    k_w, k_b = jax.random.split(key)
    fan_in = IN_CHANNELS * KERNEL_SIZE * KERNEL_SIZE
    bound = 1.0 / jnp.sqrt(fan_in)
    conv_w = jax.random.uniform(
        k_w, (OUT_CHANNELS, IN_CHANNELS, KERNEL_SIZE, KERNEL_SIZE),
        minval=-bound, maxval=bound, dtype=jnp.float32)
    conv_b = jax.random.uniform(
        k_b, (OUT_CHANNELS,), minval=-bound, maxval=bound, dtype=jnp.float32)
    bn_gamma = jnp.ones((OUT_CHANNELS,), jnp.float32)   # BatchNorm2d default
    bn_beta = jnp.zeros((OUT_CHANNELS,), jnp.float32)
    return conv_w, conv_b, bn_gamma, bn_beta


if __name__ == "__main__":
    key = jax.random.PRNGKey(0)
    k_x, k_p = jax.random.split(key)

    x = jax.random.normal(k_x, (2, IN_CHANNELS, 16, 16), dtype=jnp.float32)
    conv_w, conv_b, bn_gamma, bn_beta = init_params(k_p)

    out = conv_block_forward(x, conv_w, conv_b, bn_gamma, bn_beta)
    out = jax.block_until_ready(out)

    ref = _reference(x, conv_w, conv_b, bn_gamma, bn_beta)
    assert out.shape == ref.shape == (2, OUT_CHANNELS, 16, 16)
    assert jnp.allclose(out, ref, atol=2e-3, rtol=2e-3), "mismatch vs reference"

    print("KERNEL_OK")
</pallas_src>

<mosaic_0001>
module attributes {stable_mosaic.version = 11 : i64} {
  func.func @_conv_bn_kernel(%arg0: i32, %arg1: memref<2x8x384xf32, #tpu.memory_space<vmem>>, %arg2: memref<9x8x8xf32, #tpu.memory_space<vmem>>, %arg3: memref<8x2xf32, #tpu.memory_space<vmem>>, %arg4: memref<1x384xf32, #tpu.memory_space<vmem>>, %arg5: memref<2x8x384xf32, #tpu.memory_space<vmem>>) attributes {dimension_semantics = [#tpu.dimension_semantics<arbitrary>], iteration_bounds = array<i64: 1>, scalar_prefetch = 0 : i64, scratch_operands = 0 : i64, tpu.core_type = #tpu.core_type<tc>, window_params = [{pipeline_mode = #tpu.pipeline_mode<synchronous>, transform_indices = @transform_0, window_bounds = array<i64: 2, 8, 384>}, {pipeline_mode = #tpu.pipeline_mode<synchronous>, transform_indices = @transform_1, window_bounds = array<i64: 9, 8, 8>}, {pipeline_mode = #tpu.pipeline_mode<synchronous>, transform_indices = @transform_2, window_bounds = array<i64: 8, 2>}, {pipeline_mode = #tpu.pipeline_mode<synchronous>, transform_indices = @transform_3, window_bounds = array<i64: 1, 384>}, {pipeline_mode = #tpu.pipeline_mode<synchronous>, transform_indices = @transform_4, window_bounds = array<i64: 2, 8, 384>}]} {
    %c0 = arith.constant 0 : index
    %c0_0 = arith.constant 0 : index
    %0 = vector.load %arg4[%c0, %c0_0] : memref<1x384xf32, #tpu.memory_space<vmem>>, vector<1x384xf32>
    %cst = arith.constant 0.000000e+00 : f32
    %1 = vector.broadcast %cst : f32 to vector<8x1xf32>
    %cst_1 = arith.constant 0.000000e+00 : f32
    %2 = vector.broadcast %cst_1 : f32 to vector<8x1xf32>
    %c0_2 = arith.constant 0 : index
    %c0_3 = arith.constant 0 : index
    %c0_4 = arith.constant 0 : index
    %3 = vector.load %arg1[%c0_2, %c0_3, %c0_4] : memref<2x8x384xf32, #tpu.memory_space<vmem>>, vector<1x8x384xf32>
    %4 = vector.shape_cast %3 : vector<1x8x384xf32> to vector<8x384xf32>
    %cst_5 = arith.constant 0.000000e+00 : f32
    %5 = vector.broadcast %cst_5 : f32 to vector<8x384xf32>
    %c38_i32 = arith.constant 38 : i32
    %6 = tpu.dynamic_rotate %4 by %c38_i32 dim 1 : vector<8x384xf32>, i32 -> vector<8x384xf32>
    %c0_6 = arith.constant 0 : index
    %c0_7 = arith.constant 0 : index
    %c0_8 = arith.constant 0 : index
    %7 = vector.load %arg2[%c0_6, %c0_7, %c0_8] : memref<9x8x8xf32, #tpu.memory_space<vmem>>, vector<1x8x8xf32>
    %8 = vector.shape_cast %7 : vector<1x8x8xf32> to vector<8x8xf32>
    %cst_9 = arith.constant dense<0.000000e+00> : vector<8x384xf32>
    %9 = tpu.matmul %8, %6, %cst_9 {dimension_numbers = #tpu.dot_dimension_numbers<[1], [0], [0], [1], [0, 0, 1, 1], [], []>} : vector<8x8xf32>, vector<8x384xf32>, vector<8x384xf32> -> vector<8x384xf32>
    %10 = arith.addf %5, %9 : vector<8x384xf32>
    %c37_i32 = arith.constant 37 : i32
    %11 = tpu.dynamic_rotate %4 by %c37_i32 dim 1 : vector<8x384xf32>, i32 -> vector<8x384xf32>
    %c1 = arith.constant 1 : index
    %c0_10 = arith.constant 0 : index
    %c0_11 = arith.constant 0 : index
    %12 = vector.load %arg2[%c1, %c0_10, %c0_11] : memref<9x8x8xf32, #tpu.memory_space<vmem>>, vector<1x8x8xf32>
    %13 = vector.shape_cast %12 : vector<1x8x8xf32> to vector<8x8xf32>
    %cst_12 = arith.constant dense<0.000000e+00> : vector<8x384xf32>
    %14 = tpu.matmul %13, %11, %cst_12 {dimension_numbers = #tpu.dot_dimension_numbers<[1], [0], [0], [1], [0, 0, 1, 1], [], []>} : vector<8x8xf32>, vector<8x384xf32>, vector<8x384xf32> -> vector<8x384xf32>
    %15 = arith.addf %10, %14 : vector<8x384xf32>
    %c36_i32 = arith.constant 36 : i32
    %16 = tpu.dynamic_rotate %4 by %c36_i32 dim 1 : vector<8x384xf32>, i32 -> vector<8x384xf32>
    %c2 = arith.constant 2 : index
    %c0_13 = arith.constant 0 : index
    %c0_14 = arith.constant 0 : index
    %17 = vector.load %arg2[%c2, %c0_13, %c0_14] : memref<9x8x8xf32, #tpu.memory_space<vmem>>, vector<1x8x8xf32>
    %18 = vector.shape_cast %17 : vector<1x8x8xf32> to vector<8x8xf32>
    %cst_15 = arith.constant dense<0.000000e+00> : vector<8x384xf32>
    %19 = tpu.matmul %18, %16, %cst_15 {dimension_numbers = #tpu.dot_dimension_numbers<[1], [0], [0], [1], [0, 0, 1, 1], [], []>} : vector<8x8xf32>, vector<8x384xf32>, vector<8x384xf32> -> vector<8x384xf32>
    %20 = arith.addf %15, %19 : vector<8x384xf32>
    %c20_i32 = arith.constant 20 : i32
    %21 = tpu.dynamic_rotate %4 by %c20_i32 dim 1 : vector<8x384xf32>, i32 -> vector<8x384xf32>
    %c3 = arith.constant 3 : index
    %c0_16 = arith.constant 0 : index
    %c0_17 = arith.constant 0 : index
    %22 = vector.load %arg2[%c3, %c0_16, %c0_17] : memref<9x8x8xf32, #tpu.memory_space<vmem>>, vector<1x8x8xf32>
    %23 = vector.shape_cast %22 : vector<1x8x8xf32> to vector<8x8xf32>
    %cst_18 = arith.constant dense<0.000000e+00> : vector<8x384xf32>
    %24 = tpu.matmul %23, %21, %cst_18 {dimension_numbers = #tpu.dot_dimension_numbers<[1], [0], [0], [1], [0, 0, 1, 1], [], []>} : vector<8x8xf32>, vector<8x384xf32>, vector<8x384xf32> -> vector<8x384xf32>
    %25 = arith.addf %20, %24 : vector<8x384xf32>
    %c19_i32 = arith.constant 19 : i32
    %26 = tpu.dynamic_rotate %4 by %c19_i32 dim 1 : vector<8x384xf32>, i32 -> vector<8x384xf32>
    %c4 = arith.constant 4 : index
    %c0_19 = arith.constant 0 : index
    %c0_20 = arith.constant 0 : index
    %27 = vector.load %arg2[%c4, %c0_19, %c0_20] : memref<9x8x8xf32, #tpu.memory_space<vmem>>, vector<1x8x8xf32>
    %28 = vector.shape_cast %27 : vector<1x8x8xf32> to vector<8x8xf32>
    %cst_21 = arith.constant dense<0.000000e+00> : vector<8x384xf32>
    %29 = tpu.matmul %28, %26, %cst_21 {dimension_numbers = #tpu.dot_dimension_numbers<[1], [0], [0], [1], [0, 0, 1, 1], [], []>} : vector<8x8xf32>, vector<8x384xf32>, vector<8x384xf32> -> vector<8x384xf32>
    %30 = arith.addf %25, %29 : vector<8x384xf32>
    %c18_i32 = arith.constant 18 : i32
    %31 = tpu.dynamic_rotate %4 by %c18_i32 dim 1 : vector<8x384xf32>, i32 -> vector<8x384xf32>
    %c5 = arith.constant 5 : index
    %c0_22 = arith.constant 0 : index
    %c0_23 = arith.constant 0 : index
    %32 = vector.load %arg2[%c5, %c0_22, %c0_23] : memref<9x8x8xf32, #tpu.memory_space<vmem>>, vector<1x8x8xf32>
    %33 = vector.shape_cast %32 : vector<1x8x8xf32> to vector<8x8xf32>
    %cst_24 = arith.constant dense<0.000000e+00> : vector<8x384xf32>
    %34 = tpu.matmul %33, %31, %cst_24 {dimension_numbers = #tpu.dot_dimension_numbers<[1], [0], [0], [1], [0, 0, 1, 1], [], []>} : vector<8x8xf32>, vector<8x384xf32>, vector<8x384xf32> -> vector<8x384xf32>
    %35 = arith.addf %30, %34 : vector<8x384xf32>
    %c2_i32 = arith.constant 2 : i32
    %36 = tpu.dynamic_rotate %4 by %c2_i32 dim 1 : vector<8x384xf32>, i32 -> vector<8x384xf32>
    %c6 = arith.constant 6 : index
    %c0_25 = arith.constant 0 : index
    %c0_26 = arith.constant 0 : index
    %37 = vector.load %arg2[%c6, %c0_25, %c0_26] : memref<9x8x8xf32, #tpu.memory_space<vmem>>, vector<1x8x8xf32>
    %38 = vector.shape_cast %37 : vector<1x8x8xf32> to vector<8x8xf32>
    %cst_27 = arith.constant dense<0.000000e+00> : vector<8x384xf32>
    %39 = tpu.matmul %38, %36, %cst_27 {dimension_numbers = #tpu.dot_dimension_numbers<[1], [0], [0], [1], [0, 0, 1, 1], [], []>} : vector<8x8xf32>, vector<8x384xf32>, vector<8x384xf32> -> vector<8x384xf32>
    %40 = arith.addf %35, %39 : vector<8x384xf32>
    %c1_i32 = arith.constant 1 : i32
    %41 = tpu.dynamic_rotate %4 by %c1_i32 dim 1 : vector<8x384xf32>, i32 -> vector<8x384xf32>
    %c7 = arith.constant 7 : index
    %c0_28 = arith.constant 0 : index
    %c0_29 = arith.constant 0 : index
    %42 = vector.load %arg2[%c7, %c0_28, %c0_29] : memref<9x8x8xf32, #tpu.memory_space<vmem>>, vector<1x8x8xf32>
    %43 = vector.shape_cast %42 : vector<1x8x8xf32> to vector<8x8xf32>
    %cst_30 = arith.constant dense<0.000000e+00> : vector<8x384xf32>
    %44 = tpu.matmul %43, %41, %cst_30 {dimension_numbers = #tpu.dot_dimension_numbers<[1], [0], [0], [1], [0, 0, 1, 1], [], []>} : vector<8x8xf32>, vector<8x384xf32>, vector<8x384xf32> -> vector<8x384xf32>
    %45 = arith.addf %40, %44 : vector<8x384xf32>
    %c8 = arith.constant 8 : index
    %c0_31 = arith.constant 0 : index
    %c0_32 = arith.constant 0 : index
    %46 = vector.load %arg2[%c8, %c0_31, %c0_32] : memref<9x8x8xf32, #tpu.memory_space<vmem>>, vector<1x8x8xf32>
    %47 = vector.shape_cast %46 : vector<1x8x8xf32> to vector<8x8xf32>
    %cst_33 = arith.constant dense<0.000000e+00> : vector<8x384xf32>
    %48 = tpu.matmul %47, %4, %cst_33 {dimension_numbers = #tpu.dot_dimension_numbers<[1], [0], [0], [1], [0, 0, 1, 1], [], []>} : vector<8x8xf32>, vector<8x384xf32>, vector<8x384xf32> -> vector<8x384xf32>
    %49 = arith.addf %45, %48 : vector<8x384xf32>
    %50 = vector.broadcast %0 : vector<1x384xf32> to vector<8x384xf32>
    %51 = arith.mulf %49, %50 : vector<8x384xf32>
    %cst_34 = arith.constant dense<0.000000e+00> : vector<8xf32>
    %52 = vector.multi_reduction <add>, %51, %cst_34 [1] : vector<8x384xf32> to vector<8xf32>
    %53 = vector.shape_cast %52 : vector<8xf32> to vector<8x1xf32>
    %54 = arith.addf %1, %53 : vector<8x1xf32>
    %55 = arith.mulf %51, %49 : vector<8x384xf32>
    %cst_35 = arith.constant dense<0.000000e+00> : vector<8xf32>
    %56 = vector.multi_reduction <add>, %55, %cst_35 [1] : vector<8x384xf32> to vector<8xf32>
    %57 = vector.shape_cast %56 : vector<8xf32> to vector<8x1xf32>
    %58 = arith.addf %2, %57 : vector<8x1xf32>
    %c0_36 = arith.constant 0 : index
    %c0_37 = arith.constant 0 : index
    %c0_38 = arith.constant 0 : index
    %59 = vector.load %arg5[%c0_36, %c0_37, %c0_38] : memref<2x8x384xf32, #tpu.memory_space<vmem>>, vector<1x8x384xf32>
    %60 = vector.shape_cast %59 : vector<1x8x384xf32> to vector<8x384xf32>
    %61 = vector.shape_cast %49 : vector<8x384xf32> to vector<1x8x384xf32>
    tpu.vector_store %arg5[%c0_36, %c0_37, %c0_38], %61 {strides = array<i32>} : memref<2x8x384xf32, #tpu.memory_space<vmem>>, vector<1x8x384xf32>,
    %c1_39 = arith.constant 1 : index
    %c0_40 = arith.constant 0 : index
    %c0_41 = arith.constant 0 : index
    %62 = vector.load %arg1[%c1_39, %c0_40, %c0_41] : memref<2x8x384xf32, #tpu.memory_space<vmem>>, vector<1x8x384xf32>
    %63 = vector.shape_cast %62 : vector<1x8x384xf32> to vector<8x384xf32>
    %cst_42 = arith.constant 0.000000e+00 : f32
    %64 = vector.broadcast %cst_42 : f32 to vector<8x384xf32>
    %c38_i32_43 = arith.constant 38 : i32
    %65 = tpu.dynamic_rotate %63 by %c38_i32_43 dim 1 : vector<8x384xf32>, i32 -> vector<8x384xf32>
    %c0_44 = arith.constant 0 : index
    %c0_45 = arith.constant 0 : index
    %c0_46 = arith.constant 0 : index
    %66 = vector.load %arg2[%c0_44, %c0_45, %c0_46] : memref<9x8x8xf32, #tpu.memory_space<vmem>>, vector<1x8x8xf32>
    %67 = vector.shape_cast %66 : vector<1x8x8xf32> to vector<8x8xf32>
    %cst_47 = arith.constant dense<0.000000e+00> : vector<8x384xf32>
    %68 = tpu.matmul %67, %65, %cst_47 {dimension_numbers = #tpu.dot_dimension_numbers<[1], [0], [0], [1], [0, 0, 1, 1], [], []>} : vector<8x8xf32>, vector<8x384xf32>, vector<8x384xf32> -> vector<8x384xf32>
    %69 = arith.addf %64, %68 : vector<8x384xf32>
    %c37_i32_48 = arith.constant 37 : i32
    %70 = tpu.dynamic_rotate %63 by %c37_i32_48 dim 1 : vector<8x384xf32>, i32 -> vector<8x384xf32>
    %c1_49 = arith.constant 1 : index
    %c0_50 = arith.constant 0 : index
    %c0_51 = arith.constant 0 : index
    %71 = vector.load %arg2[%c1_49, %c0_50, %c0_51] : memref<9x8x8xf32, #tpu.memory_space<vmem>>, vector<1x8x8xf32>
    %72 = vector.shape_cast %71 : vector<1x8x8xf32> to vector<8x8xf32>
    %cst_52 = arith.constant dense<0.000000e+00> : vector<8x384xf32>
    %73 = tpu.matmul %72, %70, %cst_52 {dimension_numbers = #tpu.dot_dimension_numbers<[1], [0], [0], [1], [0, 0, 1, 1], [], []>} : vector<8x8xf32>, vector<8x384xf32>, vector<8x384xf32> -> vector<8x384xf32>
    %74 = arith.addf %69, %73 : vector<8x384xf32>
    %c36_i32_53 = arith.constant 36 : i32
    %75 = tpu.dynamic_rotate %63 by %c36_i32_53 dim 1 : vector<8x384xf32>, i32 -> vector<8x384xf32>
    %c2_54 = arith.constant 2 : index
    %c0_55 = arith.constant 0 : index
    %c0_56 = arith.constant 0 : index
    %76 = vector.load %arg2[%c2_54, %c0_55, %c0_56] : memref<9x8x8xf32, #tpu.memory_space<vmem>>, vector<1x8x8xf32>
    %77 = vector.shape_cast %76 : vector<1x8x8xf32> to vector<8x8xf32>
    %cst_57 = arith.constant dense<0.000000e+00> : vector<8x384xf32>
    %78 = tpu.matmul %77, %75, %cst_57 {dimension_numbers = #tpu.dot_dimension_numbers<[1], [0], [0], [1], [0, 0, 1, 1], [], []>} : vector<8x8xf32>, vector<8x384xf32>, vector<8x384xf32> -> vector<8x384xf32>
    %79 = arith.addf %74, %78 : vector<8x384xf32>
    %c20_i32_58 = arith.constant 20 : i32
    %80 = tpu.dynamic_rotate %63 by %c20_i32_58 dim 1 : vector<8x384xf32>, i32 -> vector<8x384xf32>
    %c3_59 = arith.constant 3 : index
    %c0_60 = arith.constant 0 : index
    %c0_61 = arith.constant 0 : index
    %81 = vector.load %arg2[%c3_59, %c0_60, %c0_61] : memref<9x8x8xf32, #tpu.memory_space<vmem>>, vector<1x8x8xf32>
    %82 = vector.shape_cast %81 : vector<1x8x8xf32> to vector<8x8xf32>
    %cst_62 = arith.constant dense<0.000000e+00> : vector<8x384xf32>
    %83 = tpu.matmul %82, %80, %cst_62 {dimension_numbers = #tpu.dot_dimension_numbers<[1], [0], [0], [1], [0, 0, 1, 1], [], []>} : vector<8x8xf32>, vector<8x384xf32>, vector<8x384xf32> -> vector<8x384xf32>
    %84 = arith.addf %79, %83 : vector<8x384xf32>
    %c19_i32_63 = arith.constant 19 : i32
    %85 = tpu.dynamic_rotate %63 by %c19_i32_63 dim 1 : vector<8x384xf32>, i32 -> vector<8x384xf32>
    %c4_64 = arith.constant 4 : index
    %c0_65 = arith.constant 0 : index
    %c0_66 = arith.constant 0 : index
    %86 = vector.load %arg2[%c4_64, %c0_65, %c0_66] : memref<9x8x8xf32, #tpu.memory_space<vmem>>, vector<1x8x8xf32>
    %87 = vector.shape_cast %86 : vector<1x8x8xf32> to vector<8x8xf32>
    %cst_67 = arith.constant dense<0.000000e+00> : vector<8x384xf32>
    %88 = tpu.matmul %87, %85, %cst_67 {dimension_numbers = #tpu.dot_dimension_numbers<[1], [0], [0], [1], [0, 0, 1, 1], [], []>} : vector<8x8xf32>, vector<8x384xf32>, vector<8x384xf32> -> vector<8x384xf32>
    %89 = arith.addf %84, %88 : vector<8x384xf32>
    %c18_i32_68 = arith.constant 18 : i32
    %90 = tpu.dynamic_rotate %63 by %c18_i32_68 dim 1 : vector<8x384xf32>, i32 -> vector<8x384xf32>
    %c5_69 = arith.constant 5 : index
    %c0_70 = arith.constant 0 : index
    %c0_71 = arith.constant 0 : index
    %91 = vector.load %arg2[%c5_69, %c0_70, %c0_71] : memref<9x8x8xf32, #tpu.memory_space<vmem>>, vector<1x8x8xf32>
    %92 = vector.shape_cast %91 : vector<1x8x8xf32> to vector<8x8xf32>
    %cst_72 = arith.constant dense<0.000000e+00> : vector<8x384xf32>
    %93 = tpu.matmul %92, %90, %cst_72 {dimension_numbers = #tpu.dot_dimension_numbers<[1], [0], [0], [1], [0, 0, 1, 1], [], []>} : vector<8x8xf32>, vector<8x384xf32>, vector<8x384xf32> -> vector<8x384xf32>
    %94 = arith.addf %89, %93 : vector<8x384xf32>
    %c2_i32_73 = arith.constant 2 : i32
    %95 = tpu.dynamic_rotate %63 by %c2_i32_73 dim 1 : vector<8x384xf32>, i32 -> vector<8x384xf32>
    %c6_74 = arith.constant 6 : index
    %c0_75 = arith.constant 0 : index
    %c0_76 = arith.constant 0 : index
    %96 = vector.load %arg2[%c6_74, %c0_75, %c0_76] : memref<9x8x8xf32, #tpu.memory_space<vmem>>, vector<1x8x8xf32>
    %97 = vector.shape_cast %96 : vector<1x8x8xf32> to vector<8x8xf32>
    %cst_77 = arith.constant dense<0.000000e+00> : vector<8x384xf32>
    %98 = tpu.matmul %97, %95, %cst_77 {dimension_numbers = #tpu.dot_dimension_numbers<[1], [0], [0], [1], [0, 0, 1, 1], [], []>} : vector<8x8xf32>, vector<8x384xf32>, vector<8x384xf32> -> vector<8x384xf32>
    %99 = arith.addf %94, %98 : vector<8x384xf32>
    %c1_i32_78 = arith.constant 1 : i32
    %100 = tpu.dynamic_rotate %63 by %c1_i32_78 dim 1 : vector<8x384xf32>, i32 -> vector<8x384xf32>
    %c7_79 = arith.constant 7 : index
    %c0_80 = arith.constant 0 : index
    %c0_81 = arith.constant 0 : index
    %101 = vector.load %arg2[%c7_79, %c0_80, %c0_81] : memref<9x8x8xf32, #tpu.memory_space<vmem>>, vector<1x8x8xf32>
    %102 = vector.shape_cast %101 : vector<1x8x8xf32> to vector<8x8xf32>
    %cst_82 = arith.constant dense<0.000000e+00> : vector<8x384xf32>
    %103 = tpu.matmul %102, %100, %cst_82 {dimension_numbers = #tpu.dot_dimension_numbers<[1], [0], [0], [1], [0, 0, 1, 1], [], []>} : vector<8x8xf32>, vector<8x384xf32>, vector<8x384xf32> -> vector<8x384xf32>
    %104 = arith.addf %99, %103 : vector<8x384xf32>
    %c8_83 = arith.constant 8 : index
    %c0_84 = arith.constant 0 : index
    %c0_85 = arith.constant 0 : index
    %105 = vector.load %arg2[%c8_83, %c0_84, %c0_85] : memref<9x8x8xf32, #tpu.memory_space<vmem>>, vector<1x8x8xf32>
    %106 = vector.shape_cast %105 : vector<1x8x8xf32> to vector<8x8xf32>
    %cst_86 = arith.constant dense<0.000000e+00> : vector<8x384xf32>
    %107 = tpu.matmul %106, %63, %cst_86 {dimension_numbers = #tpu.dot_dimension_numbers<[1], [0], [0], [1], [0, 0, 1, 1], [], []>} : vector<8x8xf32>, vector<8x384xf32>, vector<8x384xf32> -> vector<8x384xf32>
    %108 = arith.addf %104, %107 : vector<8x384xf32>
    %109 = vector.broadcast %0 : vector<1x384xf32> to vector<8x384xf32>
    %110 = arith.mulf %108, %109 : vector<8x384xf32>
    %cst_87 = arith.constant dense<0.000000e+00> : vector<8xf32>
    %111 = vector.multi_reduction <add>, %110, %cst_87 [1] : vector<8x384xf32> to vector<8xf32>
    %112 = vector.shape_cast %111 : vector<8xf32> to vector<8x1xf32>
    %113 = arith.addf %54, %112 : vector<8x1xf32>
    %114 = arith.mulf %110, %108 : vector<8x384xf32>
    %cst_88 = arith.constant dense<0.000000e+00> : vector<8xf32>
    %115 = vector.multi_reduction <add>, %114, %cst_88 [1] : vector<8x384xf32> to vector<8xf32>
    %116 = vector.shape_cast %115 : vector<8xf32> to vector<8x1xf32>
    %117 = arith.addf %58, %116 : vector<8x1xf32>
    %c1_89 = arith.constant 1 : index
    %c0_90 = arith.constant 0 : index
    %c0_91 = arith.constant 0 : index
    %118 = vector.load %arg5[%c1_89, %c0_90, %c0_91] : memref<2x8x384xf32, #tpu.memory_space<vmem>>, vector<1x8x384xf32>
    %119 = vector.shape_cast %118 : vector<1x8x384xf32> to vector<8x384xf32>
    %120 = vector.shape_cast %108 : vector<8x384xf32> to vector<1x8x384xf32>
    tpu.vector_store %arg5[%c1_89, %c0_90, %c0_91], %120 {strides = array<i32>} : memref<2x8x384xf32, #tpu.memory_space<vmem>>, vector<1x8x384xf32>,
    %cst_92 = arith.constant 0.001953125 : f32
    %121 = vector.broadcast %cst_92 : f32 to vector<8x1xf32>
    %122 = arith.mulf %113, %121 : vector<8x1xf32>
    %cst_93 = arith.constant 0.001953125 : f32
    %123 = vector.broadcast %cst_93 : f32 to vector<8x1xf32>
    %124 = arith.mulf %117, %123 : vector<8x1xf32>
    %125 = arith.mulf %122, %122 : vector<8x1xf32>
    %126 = arith.subf %124, %125 : vector<8x1xf32>
    %cst_94 = arith.constant 9.99999974E-6 : f32
    %127 = vector.broadcast %cst_94 : f32 to vector<8x1xf32>
    %128 = arith.addf %126, %127 : vector<8x1xf32>
    %129 = math.rsqrt %128 : vector<8x1xf32>
    %c0_95 = arith.constant 0 : index
    %c0_96 = arith.constant 0 : index
    %130 = vector.load %arg3[%c0_95, %c0_96] : memref<8x2xf32, #tpu.memory_space<vmem>>, vector<8x1xf32>
    %131 = arith.mulf %130, %129 : vector<8x1xf32>
    %c0_97 = arith.constant 0 : index
    %c1_98 = arith.constant 1 : index
    %132 = vector.load %arg3[%c0_97, %c1_98] : memref<8x2xf32, #tpu.memory_space<vmem>>, vector<8x1xf32>
    %133 = arith.mulf %122, %131 : vector<8x1xf32>
    %134 = arith.subf %132, %133 : vector<8x1xf32>
    %c0_99 = arith.constant 0 : index
    %c0_100 = arith.constant 0 : index
    %c0_101 = arith.constant 0 : index
    %135 = vector.load %arg5[%c0_99, %c0_100, %c0_101] : memref<2x8x384xf32, #tpu.memory_space<vmem>>, vector<1x8x384xf32>
    %136 = vector.shape_cast %135 : vector<1x8x384xf32> to vector<8x384xf32>
    %137 = vector.broadcast %131 : vector<8x1xf32> to vector<8x384xf32>
    %138 = arith.mulf %136, %137 : vector<8x384xf32>
    %139 = vector.broadcast %134 : vector<8x1xf32> to vector<8x384xf32>
    %140 = arith.addf %138, %139 : vector<8x384xf32>
    %c0_102 = arith.constant 0 : index
    %c0_103 = arith.constant 0 : index
    %c0_104 = arith.constant 0 : index
    %141 = vector.load %arg5[%c0_102, %c0_103, %c0_104] : memref<2x8x384xf32, #tpu.memory_space<vmem>>, vector<1x8x384xf32>
    %142 = vector.shape_cast %141 : vector<1x8x384xf32> to vector<8x384xf32>
    %143 = vector.shape_cast %140 : vector<8x384xf32> to vector<1x8x384xf32>
    tpu.vector_store %arg5[%c0_102, %c0_103, %c0_104], %143 {strides = array<i32>} : memref<2x8x384xf32, #tpu.memory_space<vmem>>, vector<1x8x384xf32>,
    %c1_105 = arith.constant 1 : index
    %c0_106 = arith.constant 0 : index
    %c0_107 = arith.constant 0 : index
    %144 = vector.load %arg5[%c1_105, %c0_106, %c0_107] : memref<2x8x384xf32, #tpu.memory_space<vmem>>, vector<1x8x384xf32>
    %145 = vector.shape_cast %144 : vector<1x8x384xf32> to vector<8x384xf32>
    %146 = vector.broadcast %131 : vector<8x1xf32> to vector<8x384xf32>
    %147 = arith.mulf %145, %146 : vector<8x384xf32>
    %148 = vector.broadcast %134 : vector<8x1xf32> to vector<8x384xf32>
    %149 = arith.addf %147, %148 : vector<8x384xf32>
    %c1_108 = arith.constant 1 : index
    %c0_109 = arith.constant 0 : index
    %c0_110 = arith.constant 0 : index
    %150 = vector.load %arg5[%c1_108, %c0_109, %c0_110] : memref<2x8x384xf32, #tpu.memory_space<vmem>>, vector<1x8x384xf32>
    %151 = vector.shape_cast %150 : vector<1x8x384xf32> to vector<8x384xf32>
    %152 = vector.shape_cast %149 : vector<8x384xf32> to vector<1x8x384xf32>
    tpu.vector_store %arg5[%c1_108, %c0_109, %c0_110], %152 {strides = array<i32>} : memref<2x8x384xf32, #tpu.memory_space<vmem>>, vector<1x8x384xf32>,
    return
  }
  func.func @transform_0(%arg0: i32) -> (i32, i32, i32) {
    %c0_i32 = arith.constant 0 : i32
    %c0_i32_0 = arith.constant 0 : i32
    %c0_i32_1 = arith.constant 0 : i32
    %c0_i32_2 = arith.constant 0 : i32
    return %c0_i32, %c0_i32_0, %c0_i32_1 : i32, i32, i32
  }
  func.func @transform_1(%arg0: i32) -> (i32, i32, i32) {
    %c0_i32 = arith.constant 0 : i32
    %c0_i32_0 = arith.constant 0 : i32
    %c0_i32_1 = arith.constant 0 : i32
    %c0_i32_2 = arith.constant 0 : i32
    return %c0_i32, %c0_i32_0, %c0_i32_1 : i32, i32, i32
  }
  func.func @transform_2(%arg0: i32) -> (i32, i32) {
    %c0_i32 = arith.constant 0 : i32
    %c0_i32_0 = arith.constant 0 : i32
    %c0_i32_1 = arith.constant 0 : i32
    return %c0_i32, %c0_i32_0 : i32, i32
  }
  func.func @transform_3(%arg0: i32) -> (i32, i32) {
    %c0_i32 = arith.constant 0 : i32
    %c0_i32_0 = arith.constant 0 : i32
    %c0_i32_1 = arith.constant 0 : i32
    return %c0_i32, %c0_i32_0 : i32, i32
  }
  func.func @transform_4(%arg0: i32) -> (i32, i32, i32) {
    %c0_i32 = arith.constant 0 : i32
    %c0_i32_0 = arith.constant 0 : i32
    %c0_i32_1 = arith.constant 0 : i32
    %c0_i32_2 = arith.constant 0 : i32
    return %c0_i32, %c0_i32_0, %c0_i32_1 : i32, i32, i32
  }
}

</mosaic_0001>

<bundles_post_ra>
// kernel: tpu_custom_call.1
= control target key start
LH: loop header
LB: loop body
LE: loop exit
PB: predicated region body
PF: predicated region fallthrough
CT: control target
= control target key end

     0   :  { %s3249_s19 = smov 37   ;;  %v3250_v3 = vmov 0.0   ;;  %vm3251_vm0 = vmmov 0   ;;  %s3742_s0 = inlined_call_operand.vmem [shape: f32[2,8,384], index: 0, kind: input, shape index: {}]   ;;  %s3743_s1 = inlined_call_operand.vmem [shape: f32[9,8,8], index: 1, kind: input, shape index: {}]   ;;  %s3744_s2 = inlined_call_operand.vmem [shape: f32[8,2], index: 2, kind: input, shape index: {}]   ;;  %s3745_s3 = inlined_call_operand.vmem [shape: f32[1,384], index: 3, kind: input, shape index: {}]   ;;  %s3746_s4 = inlined_call_operand.hbm [shape: f32[2,8,384], index: 4, kind: output, shape index: {}]  }
   0x1   :  { %v3292_v0 = vld [vmem:[%s3742_s0 + $0x10] sm:$0xff]  ;;  %v3297_v1 = vld [vmem:[%s3742_s0] sm:$0xff]  ;;  %v3306_v2 = vld [vmem:[%s3742_s0 + $0x8] sm:$0xff]  ;;  %3051 = vmatprep.subr.mxu1 %v3250_v3  ;;  %3053 = vmatprep.mubr.msk.f32.mxu1 %vm3251_vm0, %v3250_v3 }
   0x2   :  { %39 = vrot.lane.b32.xlu1 %v3292_v0, %s3249_s19  ;;  %35 = vrot.lane.b32.xlu0 %v3297_v1, %s3249_s19 }
   0x3   :  { %115 = vmatprep.mubr.f32.mxu0 %v3250_v3 }
   0x4   :  { %9 = vsyncpa [#allocation3], 0  ;;  %s3252_s22 = smov 38   ;;  %s3253_s23 = smov 36   ;;  %v3359_v4 = vld [vmem:[%s3742_s0 + $0x18] sm:$0xff]  ;;  %v3364_v5 = vld [vmem:[%s3742_s0 + $0x20] sm:$0xff]  ;;  %v28_v7 = vlaneseq }
   0x5   :  { %s3254_s24 = smov 20   ;;  %s3255_s25 = smov 19   ;;  %v3373_v6 = vld [vmem:[%s3742_s0 + $0x28] sm:$0xff]  ;;  %vm47_vm2 = vcmask 64512   ;;  %v3454_v24 = vld [vmem:[%s3743_s1] sm:$0xff]  ;;  %v3474_v32 = vld [vmem:[%s3743_s1 + $0x10] sm:$0xff] }
   0x6   :  { %22 = vrot.lane.b32.xlu1 %v3297_v1, %s3252_s22  ;;  %37 = vrot.lane.b32.xlu0 %v3306_v2, %s3249_s19  ;;  %s3256_s26 = smov 18   ;;  %s3257_s27 = smov 2   ;;  %v3420_v8 = vand.u32 127, %v28_v7  ;;  %v3426_v13 = vld [vmem:[%s3743_s1 + $0x8] sm:$0xff]  ;;  %v3496_v40 = vld [vmem:[%s3743_s1 + $0x18] sm:$0xff] }
   0x7   :  { %s3258_s28 = smov 1   ;;  %v3516_v47 = vld [vmem:[%s3743_s1 + $0x20] sm:$0xff]  ;;  %v3536_v54 = vld [vmem:[%s3743_s1 + $0x28] sm:$0xff]  ;;  %v3556_v61 = vld [vmem:[%s3743_s1 + $0x30] sm:$0xff]  ;;  %s3261_s29 = smov [#allocation2]  }
   0x8   :  { %vm41_vm1 = vcmp.lt.s32.totalorder %v3420_v8, 37  ;;  %vm30_vm3 = vcmp.lt.s32.totalorder %v3420_v8, 38  ;;  %vm342_vm4 = vcmp.lt.s32.totalorder %v3420_v8, 36  ;;  %vm501_vm5 = vcmp.lt.s32.totalorder %v3420_v8, 20  ;;  %s2949_s30 = sshll.u32 %s3261_s29, 4  ;;  %s2950_s30 = int_to_ptr.vmem [resolvable:$true] %s2949_s30 }
   0x9   :  { %vm660_vm6 = vcmp.lt.s32.totalorder %v3420_v8, 19  ;;  %vm819_vm7 = vcmp.lt.s32.totalorder %v3420_v8, 18  ;;  %vm978_vm8 = vcmp.lt.s32.totalorder %v3420_v8, 2  ;;  %vm1137_vm9 = vcmp.lt.s32.totalorder %v3420_v8, 1  ;;  %p3230_p1 = scmp.lt.s32.totalorder %s2950_s30, %s2950_s30 }
   0xa   :  { %26 = vrot.lane.b32.xlu1 %v3292_v0, %s3252_s22  ;;  %24 = vrot.lane.b32.xlu0 %v3306_v2, %s3252_s22 }
   0xe   :  { %336 = vrot.lane.b32.xlu0 %v3297_v1, %s3253_s23  ;;  %338 = vrot.lane.b32.xlu1 %v3306_v2, %s3253_s23 }
  0x12   :  { %340 = vrot.lane.b32.xlu0 %v3292_v0, %s3253_s23  ;;  %495 = vrot.lane.b32.xlu1 %v3297_v1, %s3254_s24 }
  0x16   :  { %499 = vrot.lane.b32.xlu1 %v3292_v0, %s3254_s24  ;;  %497 = vrot.lane.b32.xlu0 %v3306_v2, %s3254_s24 }
  0x1a   :  { %654 = vrot.lane.b32.xlu0 %v3297_v1, %s3255_s25  ;;  %656 = vrot.lane.b32.xlu1 %v3306_v2, %s3255_s25 }
  0x1e   :  { %658 = vrot.lane.b32.xlu0 %v3292_v0, %s3255_s25  ;;  %813 = vrot.lane.b32.xlu1 %v3297_v1, %s3256_s26 }
  0x22   :  { %817 = vrot.lane.b32.xlu1 %v3292_v0, %s3256_s26  ;;  %815 = vrot.lane.b32.xlu0 %v3306_v2, %s3256_s26 }
  0x26   :  { %972 = vrot.lane.b32.xlu0 %v3297_v1, %s3257_s27  ;;  %974 = vrot.lane.b32.xlu1 %v3306_v2, %s3257_s27 }
  0x2a   :  { %976 = vrot.lane.b32.xlu0 %v3292_v0, %s3257_s27  ;;  %1131 = vrot.lane.b32.xlu1 %v3297_v1, %s3258_s28 }
  0x2e   :  { %1135 = vrot.lane.b32.xlu1 %v3292_v0, %s3258_s28  ;;  %1133 = vrot.lane.b32.xlu0 %v3306_v2, %s3258_s28 }
  0x32   :  { %1488 = vrot.lane.b32.xlu0 %v3359_v4, %s3249_s19  ;;  %1490 = vrot.lane.b32.xlu1 %v3364_v5, %s3249_s19 }
  0x36   :  { %1492 = vrot.lane.b32.xlu0 %v3373_v6, %s3249_s19  ;;  %1478 = vrot.lane.b32.xlu1 %v3359_v4, %s3252_s22 }
  0x3a   :  { %1482 = vrot.lane.b32.xlu1 %v3373_v6, %s3252_s22  ;;  %1480 = vrot.lane.b32.xlu0 %v3364_v5, %s3252_s22 }
  0x3e   :  { %1786 = vrot.lane.b32.xlu0 %v3359_v4, %s3253_s23  ;;  %1788 = vrot.lane.b32.xlu1 %v3364_v5, %s3253_s23 }
  0x42   :  { %1790 = vrot.lane.b32.xlu0 %v3373_v6, %s3253_s23  ;;  %1943 = vrot.lane.b32.xlu1 %v3359_v4, %s3254_s24 }
  0x46   :  { %1947 = vrot.lane.b32.xlu1 %v3373_v6, %s3254_s24  ;;  %1945 = vrot.lane.b32.xlu0 %v3364_v5, %s3254_s24 }
  0x4a   :  { %2100 = vrot.lane.b32.xlu0 %v3359_v4, %s3255_s25  ;;  %2102 = vrot.lane.b32.xlu1 %v3364_v5, %s3255_s25 }
  0x4e   :  { %2104 = vrot.lane.b32.xlu0 %v3373_v6, %s3255_s25  ;;  %2257 = vrot.lane.b32.xlu1 %v3359_v4, %s3256_s26 }
  0x52   :  { %2261 = vrot.lane.b32.xlu1 %v3373_v6, %s3256_s26  ;;  %2259 = vrot.lane.b32.xlu0 %v3364_v5, %s3256_s26 }
  0x56   :  { %2414 = vrot.lane.b32.xlu0 %v3359_v4, %s3257_s27  ;;  %2416 = vrot.lane.b32.xlu1 %v3364_v5, %s3257_s27 }
  0x5a   :  { %2418 = vrot.lane.b32.xlu0 %v3373_v6, %s3257_s27  ;;  %2571 = vrot.lane.b32.xlu1 %v3359_v4, %s3258_s28 }
  0x5e   :  { %2575 = vrot.lane.b32.xlu1 %v3373_v6, %s3258_s28  ;;  %2573 = vrot.lane.b32.xlu0 %v3364_v5, %s3258_s28 }
  0x74   :  { %v40_v9 = vpop.permute.xlu1 %39  ;;  %v36_v10 = vpop.permute.xlu0 %35 }
  0x75   :  { %v44_v16 = vsel %vm41_vm1, %v40_v9, %v36_v10 }
  0x78   :  { %v23_v11 = vpop.permute.xlu1 %22  ;;  %v38_v12 = vpop.permute.xlu0 %37 }
  0x79   :  { %v43_v14 = vsel %vm41_vm1, %v36_v10, %v38_v12  ;;  %v42_v15 = vsel %vm41_vm1, %v38_v12, %v40_v9 }
  0x7a   :  { %51 = vmatprep.subr.mxu0 %v43_v14  ;;  %3052 = vmatpush3.msra.mxu1 %v42_v15 }
  0x7b   :  { %52 = vmatpush1.msra.mxu0 %v44_v16  ;;  %3054 = vmatmul.mubr.msk.f32.vlgmr.msra.gmra.mrb[0].mxu1 %vm47_vm2, %v3426_v13  ;;  %v3591_v16 = vld [vmem:[%s3743_s1 + $0x40] sm:$0xff] }
  0x7c   :  { %v27_v17 = vpop.permute.xlu1 %26  ;;  %2961 = vmatmul.mubr.msk.f32.vlgmr.msra.gmra.mrb[0].mxu0 %vm47_vm2, %v3426_v13  ;;  %v25_v18 = vpop.permute.xlu0 %24  ;;  %3056 = vmatprep.subr.mxu1 %v3250_v3 }
  0x7d   :  { %v33_v19 = vsel %vm30_vm3, %v27_v17, %v23_v11  ;;  %v31_v20 = vsel %vm30_vm3, %v25_v18, %v27_v17  ;;  %v32_v21 = vsel %vm30_vm3, %v23_v11, %v25_v18  ;;  %3058 = vmatprep.mubr.msk.f32.mxu1 %vm3251_vm0, %v3250_v3  ;;  %259 = vmatprep.mubr.f32.mxu0 %v3250_v3  ;;  %v3574_v11 = vld [vmem:[%s3743_s1 + $0x38] sm:$0xff] }
  0x7e   :  { %195 = vmatprep.subr.mxu0 %v32_v21  ;;  %3057 = vmatpush3.msra.mxu1 %v31_v20 }
  0x7f   :  { %196 = vmatpush1.msra.mxu0 %v33_v19  ;;  %3061 = vmatprep.subr.mxu1 %v3250_v3 }
  0x80   :  { %v337_v22 = vpop.permute.xlu0 %336  ;;  %v339_v23 = vpop.permute.xlu1 %338 }
  0x81   :  { %v344_v25 = vsel %vm342_vm4, %v337_v22, %v339_v23 }
  0x82   :  { %351 = vmatprep.subr.mxu0 %v344_v25 }
  0x83   :  { %3059 = vmatmul.mubr.msk.f32.vlgmr.msra.gmra.mrb[0].mxu1 %vm47_vm2, %v3454_v24 }
  0x84   :  { %2963 = vmatmul.mubr.msk.f32.vlgmr.msra.gmra.mrb[0].mxu0 %vm47_vm2, %v3454_v24  ;;  %v341_v26 = vpop.permute.xlu0 %340  ;;  %v496_v27 = vpop.permute.xlu1 %495  ;;  %3063 = vmatprep.mubr.msk.f32.mxu1 %vm3251_vm0, %v3250_v3 }
  0x85   :  { %v343_v28 = vsel %vm342_vm4, %v339_v23, %v341_v26  ;;  %v345_v29 = vsel %vm342_vm4, %v341_v26, %v337_v22  ;;  %415 = vmatprep.mubr.f32.mxu0 %v3250_v3 }
  0x86   :  { %352 = vmatpush1.msra.mxu0 %v345_v29  ;;  %3062 = vmatpush3.msra.mxu1 %v343_v28 }
  0x87   :  { %3066 = vmatprep.subr.mxu1 %v3250_v3 }
  0x88   :  { %v500_v30 = vpop.permute.xlu1 %499  ;;  %v498_v31 = vpop.permute.xlu0 %497 }
  0x89   :  { %v502_v33 = vsel %vm501_vm5, %v498_v31, %v500_v30  ;;  %v503_v34 = vsel %vm501_vm5, %v496_v27, %v498_v31  ;;  %v504_v35 = vsel %vm501_vm5, %v500_v30, %v496_v27 }
  0x8a   :  { %510 = vmatprep.subr.mxu0 %v503_v34 }
  0x8b   :  { %3064 = vmatmul.mubr.msk.f32.vlgmr.msra.gmra.mrb[0].mxu1 %vm47_vm2, %v3474_v32 }
  0x8c   :  { %2966 = vmatmul.mubr.msk.f32.vlgmr.msra.gmra.mrb[0].mxu0 %vm47_vm2, %v3474_v32  ;;  %v655_v36 = vpop.permute.xlu0 %654  ;;  %3067 = vmatpush3.msra.mxu1 %v502_v33  ;;  %v657_v37 = vpop.permute.xlu1 %656 }
  0x8d   :  { %511 = vmatpush1.msra.mxu0 %v504_v35  ;;  %3068 = vmatprep.mubr.msk.f32.mxu1 %vm3251_vm0, %v3250_v3  ;;  %v662_v38 = vsel %vm660_vm6, %v655_v36, %v657_v37 }
  0x8e   :  { %574 = vmatprep.mubr.f32.mxu0 %v3250_v3  ;;  %669 = vmatprep.subr.mxu0 %v662_v38 }
  0x8f   :  { %3071 = vmatprep.subr.mxu1 %v3250_v3 }
  0x90   :  { %v659_v39 = vpop.permute.xlu0 %658  ;;  %v814_v41 = vpop.permute.xlu1 %813 }
  0x91   :  { %v661_v42 = vsel %vm660_vm6, %v657_v37, %v659_v39  ;;  %v663_v43 = vsel %vm660_vm6, %v659_v39, %v655_v36 }
  0x93   :  { %3069 = vmatmul.mubr.msk.f32.vlgmr.msra.gmra.mrb[0].mxu1 %vm47_vm2, %v3496_v40 }
  0x94   :  { %2969 = vmatmul.mubr.msk.f32.vlgmr.msra.gmra.mrb[0].mxu0 %vm47_vm2, %v3496_v40  ;;  %3072 = vmatpush3.msra.mxu1 %v661_v42  ;;  %v818_v44 = vpop.permute.xlu1 %817  ;;  %v816_v45 = vpop.permute.xlu0 %815 }
  0x95   :  { %670 = vmatpush1.msra.mxu0 %v663_v43  ;;  %3073 = vmatprep.mubr.msk.f32.mxu1 %vm3251_vm0, %v3250_v3  ;;  %v821_v46 = vsel %vm819_vm7, %v814_v41, %v816_v45  ;;  %v820_v50 = vsel %vm819_vm7, %v816_v45, %v818_v44  ;;  %v822_v51 = vsel %vm819_vm7, %v818_v44, %v814_v41 }
  0x96   :  { %733 = vmatprep.mubr.f32.mxu0 %v3250_v3  ;;  %828 = vmatprep.subr.mxu0 %v821_v46 }
  0x97   :  { %3076 = vmatprep.subr.mxu1 %v3250_v3 }
  0x98   :  { %v973_v48 = vpop.permute.xlu0 %972  ;;  %v975_v49 = vpop.permute.xlu1 %974 }
  0x99   :  { %v980_v52 = vsel %vm978_vm8, %v973_v48, %v975_v49 }
  0x9b   :  { %3074 = vmatmul.mubr.msk.f32.vlgmr.msra.gmra.mrb[0].mxu1 %vm47_vm2, %v3516_v47 }
  0x9c   :  { %2972 = vmatmul.mubr.msk.f32.vlgmr.msra.gmra.mrb[0].mxu0 %vm47_vm2, %v3516_v47  ;;  %3077 = vmatpush3.msra.mxu1 %v820_v50  ;;  %v977_v53 = vpop.permute.xlu0 %976  ;;  %v1132_v57 = vpop.permute.xlu1 %1131 }
  0x9d   :  { %829 = vmatpush1.msra.mxu0 %v822_v51  ;;  %3078 = vmatprep.mubr.msk.f32.mxu1 %vm3251_vm0, %v3250_v3  ;;  %v979_v56 = vsel %vm978_vm8, %v975_v49, %v977_v53  ;;  %v981_v58 = vsel %vm978_vm8, %v977_v53, %v973_v48 }
  0x9e   :  { %892 = vmatprep.mubr.f32.mxu0 %v3250_v3  ;;  %987 = vmatprep.subr.mxu0 %v980_v52 }
  0x9f   :  { %3081 = vmatprep.subr.mxu1 %v3250_v3 }
  0xa0   :  { %v1134_v55 = vpop.permute.xlu0 %1133  ;;  %v1136_v60 = vpop.permute.xlu1 %1135 }
  0xa1   :  { %v1139_v59 = vsel %vm1137_vm9, %v1132_v57, %v1134_v55  ;;  %v1138_v62 = vsel %vm1137_vm9, %v1134_v55, %v1136_v60  ;;  %v1140_v63 = vsel %vm1137_vm9, %v1136_v60, %v1132_v57 }
  0xa3   :  { %3079 = vmatmul.mubr.msk.f32.vlgmr.msra.gmra.mrb[0].mxu1 %vm47_vm2, %v3536_v54 }
  0xa4   :  { %2975 = vmatmul.mubr.msk.f32.vlgmr.msra.gmra.mrb[0].mxu0 %vm47_vm2, %v3536_v54  ;;  %3082 = vmatpush3.msra.mxu1 %v979_v56  ;;  %v1489_v9 = vpop.permute.xlu0 %1488  ;;  %v1491_v10 = vpop.permute.xlu1 %1490 }
  0xa5   :  { %988 = vmatpush1.msra.mxu0 %v981_v58  ;;  %3083 = vmatprep.mubr.msk.f32.mxu1 %vm3251_vm0, %v3250_v3  ;;  %v1495_v15 = vsel %vm41_vm1, %v1489_v9, %v1491_v10 }
  0xa6   :  { %1051 = vmatprep.mubr.f32.mxu0 %v3250_v3  ;;  %1146 = vmatprep.subr.mxu0 %v1139_v59 }
  0xa7   :  { %3086 = vmatprep.subr.mxu1 %v3250_v3 }
  0xa8   :  { %v1493_v12 = vpop.permute.xlu0 %1492  ;;  %v1479_v14 = vpop.permute.xlu1 %1478 }
  0xab   :  { %3084 = vmatmul.mubr.msk.f32.vlgmr.msra.gmra.mrb[0].mxu1 %vm47_vm2, %v3556_v61 }
  0xac   :  { %2978 = vmatmul.mubr.msk.f32.vlgmr.msra.gmra.mrb[0].mxu0 %vm47_vm2, %v3556_v61  ;;  %3087 = vmatpush3.msra.mxu1 %v1138_v62  ;;  %v1483_v17 = vpop.permute.xlu1 %1482 }
  0xad   :  { %1147 = vmatpush1.msra.mxu0 %v1140_v63  ;;  %3088 = vmatprep.mubr.msk.f32.mxu1 %vm3251_vm0, %v3250_v3  ;;  %v1486_v22 = vsel %vm30_vm3, %v1483_v17, %v1479_v14 }
  0xae   :  { %1210 = vmatprep.mubr.f32.mxu0 %v3250_v3  ;;  %1295 = vmatprep.subr.mxu0 %v3306_v2  ;;  %v1481_v2 = vpop.permute.xlu0 %1480 }
  0xaf   :  { %3091 = vmatprep.subr.mxu1 %v3250_v3  ;;  %v1485_v19 = vsel %vm30_vm3, %v1479_v14, %v1481_v2  ;;  %v1484_v21 = vsel %vm30_vm3, %v1481_v2, %v1483_v17 }
  0xb0   :  { %v1789_v20 = vpop.permute.xlu1 %1788 }
  0xb2   :  { %v1787_v18 = vpop.permute.xlu0 %1786 }
  0xb3   :  { %3089 = vmatmul.mubr.msk.f32.vlgmr.msra.gmra.mrb[0].mxu1 %vm47_vm2, %v3574_v11  ;;  %v1793_v23 = vsel %vm342_vm4, %v1787_v18, %v1789_v20 }
  0xb4   :  { %2981 = vmatmul.mubr.msk.f32.vlgmr.msra.gmra.mrb[0].mxu0 %vm47_vm2, %v3574_v11  ;;  %3092 = vmatpush3.msra.mxu1 %v3292_v0  ;;  %v1494_v0 = vsel %vm41_vm1, %v1491_v10, %v1493_v12  ;;  %v1944_v26 = vpop.permute.xlu1 %1943 }
  0xb5   :  { %1296 = vmatpush1.msra.mxu0 %v3297_v1  ;;  %3093 = vmatprep.mubr.msk.f32.mxu1 %vm3251_vm0, %v3250_v3  ;;  %v1496_v1 = vsel %vm41_vm1, %v1493_v12, %v1489_v9 }
  0xb6   :  { %1501 = vmatprep.subr.mxu0 %v1495_v15  ;;  %3096 = vmatprep.subr.mxu1 %v3250_v3  ;;  %v1791_v25 = vpop.permute.xlu0 %1790 }
  0xb7   :  { %1359 = vmatprep.mubr.f32.mxu0 %v3250_v3  ;;  %v1792_v28 = vsel %vm342_vm4, %v1789_v20, %v1791_v25  ;;  %v1794_v29 = vsel %vm342_vm4, %v1791_v25, %v1787_v18 }
  0xb8   :  { %v1948_v30 = vpop.permute.xlu1 %1947 }
  0xb9   :  { %v1951_v35 = vsel %vm501_vm5, %v1948_v30, %v1944_v26 }
  0xba   :  { %v1946_v27 = vpop.permute.xlu0 %1945 }
  0xbb   :  { %3094 = vmatmul.mubr.msk.f32.vlgmr.msra.gmra.mrb[0].mxu1 %vm47_vm2, %v3591_v16  ;;  %v1949_v34 = vsel %vm501_vm5, %v1946_v27, %v1948_v30 }
  0xbc   :  { %3097 = vmatpush3.msra.mxu1 %v1494_v0  ;;  %2984 = vmatmul.mubr.msk.f32.vlgmr.msra.gmra.mrb[0].mxu0 %vm47_vm2, %v3591_v16  ;;  %v2103_v33 = vpop.permute.xlu1 %2102 }
  0xbd   :  { %1502 = vmatpush1.msra.mxu0 %v1496_v1  ;;  %3098 = vmatprep.mubr.msk.f32.mxu1 %vm3251_vm0, %v3250_v3 }
  0xbe   :  { %1565 = vmatprep.mubr.f32.mxu0 %v3250_v3  ;;  %1645 = vmatprep.subr.mxu0 %v1485_v19  ;;  %v2101_v31 = vpop.permute.xlu0 %2100 }
  0xbf   :  { %3099 = vmatmul.mubr.msk.f32.vlgmr.msra.gmra.mrb[2].mxu1 %vm47_vm2, %v3426_v13  ;;  %3101 = vmatprep.subr.mxu1 %v3250_v3 }
  0xc0   :  { %2990 = vmatmul.mubr.msk.f32.vlgmr.msra.gmra.mrb[2].mxu0 %vm47_vm2, %v3426_v13  ;;  %3102 = vmatpush3.msra.mxu1 %v1484_v21  ;;  %v1950_v13 = vsel %vm501_vm5, %v1944_v26, %v1946_v27  ;;  %v2258_v37 = vpop.permute.xlu1 %2257 }
  0xc1   :  { %1646 = vmatpush1.msra.mxu0 %v1486_v22  ;;  %3103 = vmatprep.mubr.msk.f32.mxu1 %vm3251_vm0, %v3250_v3 }
  0xc2   :  { %1709 = vmatprep.mubr.f32.mxu0 %v3250_v3  ;;  %1799 = vmatprep.subr.mxu0 %v1793_v23  ;;  %v2105_v36 = vpop.permute.xlu0 %2104 }
  0xc3   :  { %3106 = vmatprep.subr.mxu1 %v3250_v3  ;;  %v2106_v39 = vsel %vm660_vm6, %v2103_v33, %v2105_v36  ;;  %v2108_v41 = vsel %vm660_vm6, %v2105_v36, %v2101_v31 }
  0xc4   :  { %v2262_v42 = vpop.permute.xlu1 %2261 }
  0xc5   :  { %v2265_v46 = vsel %vm819_vm7, %v2262_v42, %v2258_v37 }
  0xc6   :  { %v2260_v38 = vpop.permute.xlu0 %2259 }
  0xc7   :  { %3104 = vmatmul.mubr.msk.f32.vlgmr.msra.gmra.mrb[2].mxu1 %vm47_vm2, %v3454_v24  ;;  %v2263_v45 = vsel %vm819_vm7, %v2260_v38, %v2262_v42  ;;  %v2902_v42 = vld [vmem:[%s3744_s2] sm:$0xff]  ;;  %s3225_s2 = scalar_lea.vmem %s2950_s30, 768 }
  0xc8   :  { %2992 = vmatmul.mubr.msk.f32.vlgmr.msra.gmra.mrb[2].mxu0 %vm47_vm2, %v3454_v24  ;;  %3107 = vmatpush3.msra.mxu1 %v1792_v28  ;;  %v2107_v24 = vsel %vm660_vm6, %v2101_v31, %v2103_v33  ;;  %v2417_v44 = vpop.permute.xlu1 %2416  ;;  %p3226_p0 = scmp.ne.s32.totalorder %s2950_s30, %s3225_s2  ;;  %p3231_p2 = scmp.lt.s32.totalorder %s3225_s2, %s3225_s2 }
  0xc9   :  { %1800 = vmatpush1.msra.mxu0 %v1794_v29  ;;  %3108 = vmatprep.mubr.msk.f32.mxu1 %vm3251_vm0, %v3250_v3 }
  0xca   :  { %1863 = vmatprep.mubr.f32.mxu0 %v3250_v3  ;;  %1956 = vmatprep.subr.mxu0 %v1950_v13  ;;  %v2415_v43 = vpop.permute.xlu0 %2414  ;;  %v3259_v13 = vmov 0   ;;  %p3232_p3 = por %p3231_p2, %p3230_p1 }
  0xcb   :  { %3111 = vmatprep.subr.mxu1 %v3250_v3  ;;  %3220 = vset.pattern.permute.xlu0 %v3259_v13 }
  0xcc   :  { %v2572_v51 = vpop.permute.xlu1 %2571  ;;  %p3233_p4 = pnand %p3232_p3, %p3226_p0 }
  0xce   :  { %v2419_v48 = vpop.permute.xlu0 %2418 }
  0xcf   :  { %3109 = vmatmul.mubr.msk.f32.vlgmr.msra.gmra.mrb[2].mxu1 %vm47_vm2, %v3474_v32  ;;  %v2420_v50 = vsel %vm978_vm8, %v2417_v44, %v2419_v48  ;;  %v2422_v52 = vsel %vm978_vm8, %v2419_v48, %v2415_v43 }
  0xd0   :  { %2995 = vmatmul.mubr.msk.f32.vlgmr.msra.gmra.mrb[2].mxu0 %vm47_vm2, %v3474_v32  ;;  %3112 = vmatpush3.msra.mxu1 %v1949_v34  ;;  %v2264_v32 = vsel %vm819_vm7, %v2258_v37, %v2260_v38  ;;  %v2576_v53 = vpop.permute.xlu1 %2575 }
  0xd1   :  { %1957 = vmatpush1.msra.mxu0 %v1951_v35  ;;  %3113 = vmatprep.mubr.msk.f32.mxu1 %vm3251_vm0, %v3250_v3  ;;  %v2579_v56 = vsel %vm1137_vm9, %v2576_v53, %v2572_v51 }
  0xd2   :  { %2020 = vmatprep.mubr.f32.mxu0 %v3250_v3  ;;  %2113 = vmatprep.subr.mxu0 %v2107_v24  ;;  %v2574_v49 = vpop.permute.xlu0 %2573 }
  0xd3   :  { %3116 = vmatprep.subr.mxu1 %v3250_v3  ;;  %v2577_v55 = vsel %vm1137_vm9, %v2574_v49, %v2576_v53 }
  0xd7   :  { %3114 = vmatmul.mubr.msk.f32.vlgmr.msra.gmra.mrb[2].mxu1 %vm47_vm2, %v3496_v40 }
  0xd8   :  { %2998 = vmatmul.mubr.msk.f32.vlgmr.msra.gmra.mrb[2].mxu0 %vm47_vm2, %v3496_v40  ;;  %3117 = vmatpush3.msra.mxu1 %v2106_v39  ;;  %v2421_v40 = vsel %vm978_vm8, %v2415_v43, %v2417_v44 }
  0xd9   :  { %2114 = vmatpush1.msra.mxu0 %v2108_v41  ;;  %3118 = vmatprep.mubr.msk.f32.mxu1 %vm3251_vm0, %v3250_v3 }
  0xda   :  { %2177 = vmatprep.mubr.f32.mxu0 %v3250_v3  ;;  %2270 = vmatprep.subr.mxu0 %v2264_v32  ;;  %v3260_v32 = vmov 1  }
  0xdb   :  { %3121 = vmatprep.subr.mxu1 %v3250_v3  ;;  %3221 = vset.pattern.permute.xlu1 %v3260_v32 }
  0xdf   :  { %3119 = vmatmul.mubr.msk.f32.vlgmr.msra.gmra.mrb[2].mxu1 %vm47_vm2, %v3516_v47 }
  0xe0   :  { %3001 = vmatmul.mubr.msk.f32.vlgmr.msra.gmra.mrb[2].mxu0 %vm47_vm2, %v3516_v47  ;;  %3122 = vmatpush3.msra.mxu1 %v2263_v45  ;;  %v2578_v47 = vsel %vm1137_vm9, %v2572_v51, %v2574_v49 }
  0xe1   :  { %2271 = vmatpush1.msra.mxu0 %v2265_v46  ;;  %3123 = vmatprep.mubr.msk.f32.mxu1 %vm3251_vm0, %v3250_v3 }
  0xe2   :  { %2334 = vmatprep.mubr.f32.mxu0 %v3250_v3  ;;  %2427 = vmatprep.subr.mxu0 %v2421_v40 }
  0xe3   :  { %3126 = vmatprep.subr.mxu1 %v3250_v3 }
  0xe7   :  { %3124 = vmatmul.mubr.msk.f32.vlgmr.msra.gmra.mrb[2].mxu1 %vm47_vm2, %v3536_v54 }
  0xe8   :  { %3004 = vmatmul.mubr.msk.f32.vlgmr.msra.gmra.mrb[2].mxu0 %vm47_vm2, %v3536_v54  ;;  %3127 = vmatpush3.msra.mxu1 %v2420_v50 }
  0xe9   :  { %2428 = vmatpush1.msra.mxu0 %v2422_v52  ;;  %3128 = vmatprep.mubr.msk.f32.mxu1 %vm3251_vm0, %v3250_v3 }
  0xea   :  { %2491 = vmatprep.mubr.f32.mxu0 %v3250_v3  ;;  %2584 = vmatprep.subr.mxu0 %v2578_v47 }
  0xeb   :  { %3131 = vmatprep.subr.mxu1 %v3250_v3 }
  0xef   :  { %3129 = vmatmul.mubr.msk.f32.vlgmr.msra.gmra.mrb[2].mxu1 %vm47_vm2, %v3556_v61 }
  0xf0   :  { %3007 = vmatmul.mubr.msk.f32.vlgmr.msra.gmra.mrb[2].mxu0 %vm47_vm2, %v3556_v61  ;;  %3132 = vmatpush3.msra.mxu1 %v2577_v55 }
  0xf1   :  { %2585 = vmatpush1.msra.mxu0 %v2579_v56  ;;  %3133 = vmatprep.mubr.msk.f32.mxu1 %vm3251_vm0, %v3250_v3 }
  0xf2   :  { %2648 = vmatprep.mubr.f32.mxu0 %v3250_v3  ;;  %2732 = vmatprep.subr.mxu0 %v3364_v5  ;;  %v1441_v5 = vshrl.u32 %v28_v7, 7 }
  0xf3   :  { %3136 = vmatprep.subr.mxu1 %v3250_v3 }
  0xf4   :  { %v1442_v8 = vsub.s32 0, %v1441_v5  ;;  %v1446_v54 = vsub.s32 1, %v1441_v5 }
  0xf7   :  { %3134 = vmatmul.mubr.msk.f32.vlgmr.msra.gmra.mrb[2].mxu1 %vm47_vm2, %v3574_v11 }
  0xf8   :  { %3010 = vmatmul.mubr.msk.f32.vlgmr.msra.gmra.mrb[2].mxu0 %vm47_vm2, %v3574_v11  ;;  %3137 = vmatpush3.msra.mxu1 %v3373_v6  ;;  %v18_v6 = vld [vmem:[%s3745_s3] sm:$0x7] }
  0xf9   :  { %2733 = vmatpush1.msra.mxu0 %v3359_v4  ;;  %3138 = vmatprep.mubr.msk.f32.mxu1 %vm3251_vm0, %v3250_v3  ;;  %v1450_v4 = vsub.s32 2, %v1441_v5  ;;  %v1443_v57 = vrot.slane %v18_v6, %v1442_v8  ;;  %v1447_v58 = vrot.slane %v18_v6, %v1446_v54 }
  0xfa   :  { %2796 = vmatprep.mubr.f32.mxu0 %v3250_v3 }
  0xfb   :  { %v1451_v59 = vrot.slane %v18_v6, %v1450_v4 }
  0xff   :  { %3139 = vmatmul.mubr.msk.f32.vlgmr.msra.gmra.mrb[2].mxu1 %vm47_vm2, %v3591_v16 }
 0x100   :  { %3013 = vmatmul.mubr.msk.f32.vlgmr.msra.gmra.mrb[2].mxu0 %vm47_vm2, %v3591_v16 }
 0x18e   :  { %v3721_v60 = vpop.f32.mrb[0].mxu1 }
 0x18f   :  { %v1361_v3 = vpop.f32.mrb[0].mxu0  ;;  %v3095_v61 = vpop.f32.mrb[1].mxu1  ;;  %v1457_v10 = vmul.f32 %v1451_v59, %v3721_v60 }
 0x190   :  { %v1455_v62 = vmul.f32 %v1443_v57, %v1361_v3  ;;  %v1363_v63 = vpop.f32.mrb[1].mxu0 }
 0x191   :  { %v1456_v9 = vmul.f32 %v1447_v58, %v1363_v63  ;;  %v1465_v15 = vmul.f32 %v1457_v10, %v3721_v60 }
 0x192   :  { %v1463_v7 = vmul.f32 %v1455_v62, %v1361_v3 }
 0x193   :  { %v1464_v11 = vmul.f32 %v1456_v9, %v1363_v63  ;;  %v1458_v12 = vadd.f32 %v1456_v9, %v1455_v62 }
 0x195   :  { %v1459_v14 = vadd.f32 %v1458_v12, %v1457_v10  ;;  %v1466_v2 = vadd.f32 %v1464_v11, %v1463_v7 }
 0x197   :  { %1460 = vadd.xlane.f32.xlu0 %v1459_v14  ;;  %v1467_v16 = vadd.f32 %v1466_v2, %v1465_v15 }
 0x19b   :  { %1468 = vadd.xlane.f32.xlu0 %v1467_v16 }
 0x1d2   :  { %v2869_v17 = vpop.f32.mrb[2].mxu1 }
 0x1d3   :  { %v2798_v0 = vpop.f32.mrb[2].mxu0  ;;  %v3140_v1 = vpop.f32.mrb[3].mxu1  ;;  %v2878_v21 = vmul.f32 %v2869_v17, %v1451_v59 }
 0x1d4   :  { %v2876_v18 = vmul.f32 %v2798_v0, %v1443_v57  ;;  %v2800_v19 = vpop.f32.mrb[3].mxu0 }
 0x1d5   :  { %v2877_v20 = vmul.f32 %v2800_v19, %v1447_v58  ;;  %v2886_v27 = vmul.f32 %v2878_v21, %v2869_v17 }
 0x1d6   :  { %v2884_v22 = vmul.f32 %v2876_v18, %v2798_v0 }
 0x1d7   :  { %v2885_v23 = vmul.f32 %v2877_v20, %v2800_v19  ;;  %v2879_v25 = vadd.f32 %v2877_v20, %v2876_v18 }
 0x1d9   :  { %v2880_v26 = vadd.f32 %v2879_v25, %v2878_v21  ;;  %v2887_v28 = vadd.f32 %v2885_v23, %v2884_v22 }
 0x1db   :  { %2881 = vadd.xlane.f32.xlu1 %v2880_v26  ;;  %v2888_v29 = vadd.f32 %v2887_v28, %v2886_v27 }
 0x1dd   :  { %2889 = vadd.xlane.f32.xlu0 %v2888_v29 }
 0x224   :  { %v1461_v30 = vpop.xlane.xlu0 %1460 }
 0x228   :  { %v1469_v31 = vpop.xlane.xlu0 %1468 }
 0x268   :  { %v2882_v33 = vpop.xlane.xlu1 %2881 }
 0x269   :  { %v2883_v34 = vadd.f32 %v2882_v33, %v1461_v30 }
 0x26a   :  { %v2890_v35 = vpop.xlane.xlu0 %2889 }
 0x26b   :  { %v2896_v24 = vmul.f32 0.001953125, %v2883_v34  ;;  %v2891_v36 = vadd.f32 %v2890_v35, %v1469_v31 }
 0x26d   :  { %v2898_v37 = vmul.f32 %v2896_v24, %v2896_v24  ;;  %v2897_v38 = vmul.f32 0.001953125, %v2891_v36 }
 0x26f   :  { %v2899_v39 = vsub.f32 %v2897_v38, %v2898_v37 }
 0x271   :  { %v2900_v41 = vadd.f32 1e-05, %v2899_v39 }
 0x273   :  { %3223 = vrsqrt.f32 %v2900_v41 }
 0x27d   :  { %v3224_v43 = vpop.eup %3223 }
 0x27e   :  { %v2903_v44 = vmul.f32 %v3224_v43, %v2902_v42 }
 0x280   :  { %2915 = vperm.xlu0 %3220, %v2903_v44   ;;  %v2904_v45 = vmul.f32 %v2903_v44, %v2896_v24 }
 0x282   :  { %2906 = vrot.lane.b32.xlu1 %v2904_v45, %s3258_s28 }
 0x284   :  { %3222 = vset.pattern.permute.xlu0 %v3260_v32 }
 0x2f4   :  { %v2907_v46 = vpop.permute.xlu1 %2906 }
 0x2f5   :  { %v2909_v40 = vsub.f32 %v2902_v42, %v2907_v46 }
 0x2f7   :  { %2923 = vperm.xlu1 %3221, %v2909_v40  }
 0x2ff   :  { %v2916_v48 = vpop.permute.xlu0 %2915 }
 0x300   :  { %v2918_v49 = vmul.f32 %v2916_v48, %v1361_v3  ;;  %v2919_v50 = vmul.f32 %v2916_v48, %v1363_v63  ;;  %v2920_v51 = vmul.f32 %v2916_v48, %v3721_v60  ;;  %v2935_v52 = vmul.f32 %v2916_v48, %v2798_v0 }
 0x301   :  { %v2936_v47 = vmul.f32 %v2916_v48, %v2800_v19  ;;  %v2937_v53 = vmul.f32 %v2916_v48, %v2869_v17 }
 0x376   :  { %v2924_v55 = vpop.permute.xlu1 %2923 }
 0x377   :  { %v2926_v56 = vadd.f32 %v2924_v55, %v2918_v49  ;;  %v2927_v5 = vadd.f32 %v2924_v55, %v2919_v50  ;;  %v2928_v8 = vadd.f32 %v2924_v55, %v2920_v51  ;;  %v2938_v6 = vadd.f32 %v2935_v52, %v2924_v55 }
 0x378   :  { %v2939_v54 = vadd.f32 %v2936_v47, %v2924_v55  ;;  %v2940_v4 = vadd.f32 %v2937_v53, %v2924_v55 }
 0x379   :  { %2929 = vst [vmem:[#allocation2] sm:$0xff] %v2926_v56  ;;  %2930 = vst [vmem:[#allocation2 + $0x8] sm:$0xff] %v2927_v5 }
 0x37a   :  { %2931 = vst [vmem:[#allocation2 + $0x10] sm:$0xff] %v2928_v8  ;;  %2941 = vst [vmem:[#allocation2 + $0x18] sm:$0xff] %v2938_v6 }
 0x37b   :  { %2942 = vst [vmem:[#allocation2 + $0x20] sm:$0xff] %v2939_v54  ;;  %2943 = vst [vmem:[#allocation2 + $0x28] sm:$0xff] %v2940_v4 }
 0x37c   :  { %3236 = shalt.err (!%p3233_p4)
}
 0x37d   :  { %s3237_s6 = scalar_lea.hbm %s3746_s4, 768 }
 0x37e   :  { %p3238_p5 = scmp.ne.s32.totalorder %s3746_s4, %s3237_s6  ;;  %p3241_p6 = scmp.lt.u32.totalorder %s3237_s6, %s3746_s4 }
 0x380   :  { %p3243_p7 = pnand %p3241_p6, %p3238_p5 }
 0x382   :  { %3246 = shalt.err (!%p3243_p7)
}
 0x383   :  { %s3262_s10 = smov 384   ;;  %s3263_s11 = smov 24  }
 0x384   :  { %2955 = dma.vmem_to_hbm [thread:$0]  %s2950_s30, 768, %s3746_s4, [#allocation3], %s3262_s10, %s3262_s10, %s3263_s11  }
 0x385   :  { %3247 = dma.done.wait [#allocation3], 768  }
 0x386   :  { %3248 = vsyncadd [#allocation3], 4294966528 }
 0x387   :  { %2959 = vsyncpa [#allocation3], 1 }

</bundles_post_ra>
